<compile_context>
chip_gen: v5e
topology: v5e:2x2
jax: 0.10.0
libtpu: 0.0.40
codegen_flags: <defaults>
</compile_context>

<pallas_src>
import jax
import jax.numpy as jnp
from jax.experimental import pallas as pl
from jax.experimental.pallas import tpu as pltpu


def _round_up(x, m):
    return ((x + m - 1) // m) * m


def dfdecision_kernel(s_ref,               # SMEM (3,): [w1, w2, w3 + b2]
                      cy_ref,              # VMEM (TBP, P)    packed cy tile
                      u_ref,               # VMEM (TBP, P*D)  packed u tile
                      w1b_ref,             # VMEM (P*D, P*H)  block-diag W1 (resident)
                      b1_ref,              # VMEM (1, P*H)    tiled bias     (resident)
                      w2b_ref,             # VMEM (P*H, P)    block-diag W2  (resident)
                      o_ref):              # VMEM (TBP, P)    packed output tile
    # Layer 1 on the MXU: (TBP, P*D) @ (P*D, P*H), f32 accumulation.
    h = jnp.dot(u_ref[...], w1b_ref[...], preferred_element_type=jnp.float32)
    h = jnp.maximum(h + b1_ref[...], 0.0)                        # bias + ReLU (VPU)

    # Layer 2 (H -> 1, packed): block-diagonal W2 yields one h2 per lane group.
    h2 = jnp.dot(h, w2b_ref[...], preferred_element_type=jnp.float32)   # (TBP, P)

    # Polynomial branch fused with h2: w1*cy^2 + w2*cy + (w3 + b2) + h2.
    cy = cy_ref[...]
    w1c = s_ref[0]
    w2c = s_ref[1]
    c0 = s_ref[2]
    o_ref[...] = (w1c * cy * cy + w2c * cy + c0 + h2).astype(o_ref.dtype)


def dfdecision_forward(cy, u, params, *, block_b=32768,
                       compute_dtype=jnp.bfloat16,
                       vmem_budget_bytes=40 * 1024 * 1024):
    """cy: (B, 1) or (B,), u: (B, D)  ->  (B, 1) float32."""
    B, D = u.shape
    w1_s, w2_s, w3_s, W1, b1, W2, b2 = params
    H = W1.shape[1]
    itemsize = jnp.dtype(compute_dtype).itemsize

    # Batch-packing factor: pack p consecutive batch rows into one lane row.
    p = max(1, min(8, 128 // max(D, 1)))

    # Scalars for SMEM: [w1, w2, w3 + b2]  (b2 folded into the constant).
    scalars = jnp.concatenate([
        jnp.reshape(w1_s, (-1,))[:1],
        jnp.reshape(w2_s, (-1,))[:1],
        jnp.reshape(w3_s + b2, (-1,))[:1],
    ]).astype(jnp.float32)

    # Block-diagonal packed weights, built once on the host.
    eye_p = jnp.eye(p, dtype=jnp.float32)
    w1_blk = jnp.kron(eye_p, W1.astype(jnp.float32)).astype(compute_dtype)   # (P*D, P*H)
    w2_blk = jnp.kron(eye_p, W2.reshape(H, 1).astype(jnp.float32))           # (P*H, P)
    b1_t = jnp.tile(b1.reshape(1, H).astype(jnp.float32), (1, p))            # (1, P*H)

    # --- Tile sizing: large tiles, bounded by an explicit VMEM footprint. ---
    def blk_bytes(rows, cols, isz):
        # Conservative VMEM block estimate including (8, 128) padding.
        return _round_up(max(rows, 1), 8) * _round_up(max(cols, 1), 128) * isz

    def footprint(tbp_):
        return 2 * (blk_bytes(tbp_, p * D, itemsize)          # u tile (double-buffered)
                    + 2 * blk_bytes(tbp_, p, 4)                # cy tile + out tile
                    + blk_bytes(p * D, p * H, itemsize)        # W1 block-diag
                    + blk_bytes(1, p * H, 4)                   # b1
                    + blk_bytes(p * H, p, 4))                  # W2 block-diag

    tb = _round_up(max(1, min(block_b, B)), 8 * p)
    while footprint(tb // p) > vmem_budget_bytes and tb > 8 * p:
        tb = max(8 * p, _round_up(tb // 2, 8 * p))
    tbp = tb // p
    bp = _round_up(B, tb)
    grid = (bp // tb,)
    vmem_limit = int(min(64 * 1024 * 1024,
                         max(16 * 1024 * 1024, footprint(tbp) + (2 << 20))))

    # --- Pack inputs: pad batch to a tile multiple, then contiguous reshapes. ---
    u_p = u.astype(compute_dtype)
    cy_p = jnp.reshape(cy, (B, 1)).astype(jnp.float32)
    if bp != B:
        u_p = jnp.pad(u_p, ((0, bp - B), (0, 0)))
        cy_p = jnp.pad(cy_p, ((0, bp - B), (0, 0)))
    u_pk = u_p.reshape(bp // p, p * D)
    cy_pk = cy_p.reshape(bp // p, p)

    cost = pl.CostEstimate(
        flops=int(2 * bp * H * (D + 1)),
        transcendentals=0,
        bytes_accessed=int(bp * (D * itemsize + 8)
                           + w1_blk.size * itemsize + w2_blk.size * 4),
    )

    out = pl.pallas_call(
        dfdecision_kernel,
        out_shape=jax.ShapeDtypeStruct((bp // p, p), jnp.float32),
        grid=grid,
        in_specs=[
            pl.BlockSpec(memory_space=pltpu.MemorySpace.SMEM),   # folded scalars
            pl.BlockSpec((tbp, p), lambda i: (i, 0)),            # cy tile (packed)
            pl.BlockSpec((tbp, p * D), lambda i: (i, 0)),        # u tile (packed, streamed)
            pl.BlockSpec((p * D, p * H), lambda i: (0, 0)),      # W1 block-diag (resident)
            pl.BlockSpec((1, p * H), lambda i: (0, 0)),          # b1 (resident)
            pl.BlockSpec((p * H, p), lambda i: (0, 0)),          # W2 block-diag (resident)
        ],
        out_specs=pl.BlockSpec((tbp, p), lambda i: (i, 0)),
        compiler_params=pltpu.CompilerParams(
            dimension_semantics=("parallel",),
            vmem_limit_bytes=vmem_limit,
        ),
        cost_estimate=cost,
    )(scalars, cy_pk, u_pk, w1_blk, b1_t, w2_blk)

    # Unpack: (BP/P, P) -> (BP, 1) is a free contiguous reshape; drop padding.
    return out.reshape(bp, 1)[:B]


def dfdecision_ref(cy, u, params, compute_dtype=jnp.float32):
    """Pure-JAX reference; compute_dtype controls the layer-1 matmul precision."""
    w1_s, w2_s, w3_s, W1, b1, W2, b2 = params
    cy = jnp.reshape(cy, (-1, 1)).astype(jnp.float32)
    h1 = w1_s * cy ** 2 + w2_s * cy + w3_s
    h = jnp.dot(u.astype(compute_dtype), W1.astype(compute_dtype),
                preferred_element_type=jnp.float32)
    h = jnp.maximum(h + b1.reshape(1, -1), 0.0)
    # Layer 2 as an exact f32 elementwise multiply + reduce.
    h2 = jnp.sum(h * W2.reshape(1, -1), axis=-1, keepdims=True) + b2
    return h1 + h2


if __name__ == "__main__":
    key = jax.random.PRNGKey(0)
    D, H = 16, 32
    k = jax.random.split(key, 8)

    # Module parameters (deterministic synthetic init).
    w1_s = jnp.zeros((1,), jnp.float32)                       # buffer torch.Tensor([0])
    w2_s = jax.random.normal(k[0], (1,), jnp.float32)         # nn.Parameter(randn(1))
    w3_s = jax.random.normal(k[1], (1,), jnp.float32)         # nn.Parameter(randn(1))
    W1 = jax.random.normal(k[2], (D, H), jnp.float32) / jnp.sqrt(D)
    b1 = jax.random.normal(k[3], (H,), jnp.float32) * 0.01
    W2 = jax.random.normal(k[4], (H, 1), jnp.float32) / jnp.sqrt(H)
    b2 = jax.random.normal(k[5], (1,), jnp.float32) * 0.01
    params = (w1_s, w2_s, w3_s, W1, b1, W2, b2)

    # Small single-tile path, full f32 compute (sanity check of wiring/packing;
    # tolerance covers the MXU's f32 matmul pass decomposition).
    B = 8
    cy = jax.random.normal(k[6], (B, 1), jnp.float32)
    u = jax.random.normal(k[7], (B, D), jnp.float32)
    out = jax.block_until_ready(
        dfdecision_forward(cy, u, params, compute_dtype=jnp.float32))
    ref = dfdecision_ref(cy, u, params, compute_dtype=jnp.float32)
    assert out.shape == (B, 1)
    assert jnp.allclose(out, ref, atol=1e-2, rtol=1e-2), (out, ref)

    # Multi-tile path (batch grid, padding, resident weights) with the default
    # bf16 u/W1 stream, checked against a bf16-matmul reference.
    B2 = 300
    cy2 = jax.random.normal(k[6], (B2, 1), jnp.float32)
    u2 = jax.random.normal(k[7], (B2, D), jnp.float32)
    out2 = jax.block_until_ready(
        dfdecision_forward(cy2, u2, params, block_b=128,
                           compute_dtype=jnp.bfloat16))
    ref2 = dfdecision_ref(cy2, u2, params, compute_dtype=jnp.bfloat16)
    assert out2.shape == (B2, 1)
    assert jnp.allclose(out2, ref2, atol=1e-2, rtol=1e-2), (out2, ref2)

    print("KERNEL_OK")
</pallas_src>

<mosaic_0001>
module attributes {stable_mosaic.version = 11 : i64} {
  func.func @dfdecision_kernel(%arg0: i32, %arg1: memref<3xf32, #tpu.memory_space<smem>>, %arg2: memref<8x8xf32, #tpu.memory_space<vmem>>, %arg3: memref<8x128xf32, #tpu.memory_space<vmem>>, %arg4: memref<128x256xf32, #tpu.memory_space<vmem>>, %arg5: memref<1x256xf32, #tpu.memory_space<vmem>>, %arg6: memref<256x8xf32, #tpu.memory_space<vmem>>, %arg7: memref<8x8xf32, #tpu.memory_space<vmem>>) attributes {dimension_semantics = [#tpu.dimension_semantics<parallel>], iteration_bounds = array<i64: 1>, scalar_prefetch = 0 : i64, scratch_operands = 0 : i64, tpu.core_type = #tpu.core_type<tc>, window_params = [{transform_indices = @transform_0, window_bounds = array<i64: 3>}, {transform_indices = @transform_1, window_bounds = array<i64: 8, 8>}, {transform_indices = @transform_2, window_bounds = array<i64: 8, 128>}, {pipeline_mode = #tpu.pipeline_mode<synchronous>, transform_indices = @transform_3, window_bounds = array<i64: 128, 256>}, {pipeline_mode = #tpu.pipeline_mode<synchronous>, transform_indices = @transform_4, window_bounds = array<i64: 1, 256>}, {pipeline_mode = #tpu.pipeline_mode<synchronous>, transform_indices = @transform_5, window_bounds = array<i64: 256, 8>}, {transform_indices = @transform_6, window_bounds = array<i64: 8, 8>}]} {
    %c0 = arith.constant 0 : index
    %c0_0 = arith.constant 0 : index
    %0 = vector.load %arg3[%c0, %c0_0] : memref<8x128xf32, #tpu.memory_space<vmem>>, vector<8x128xf32>
    %c0_1 = arith.constant 0 : index
    %c0_2 = arith.constant 0 : index
    %1 = vector.load %arg4[%c0_1, %c0_2] : memref<128x256xf32, #tpu.memory_space<vmem>>, vector<128x256xf32>
    %cst = arith.constant dense<0.000000e+00> : vector<8x256xf32>
    %2 = tpu.matmul %0, %1, %cst {dimension_numbers = #tpu.dot_dimension_numbers<[1], [0], [0], [1], [0, 0, 1, 1], [], []>} : vector<8x128xf32>, vector<128x256xf32>, vector<8x256xf32> -> vector<8x256xf32>
    %c0_3 = arith.constant 0 : index
    %c0_4 = arith.constant 0 : index
    %3 = vector.load %arg5[%c0_3, %c0_4] : memref<1x256xf32, #tpu.memory_space<vmem>>, vector<1x256xf32>
    %4 = vector.broadcast %3 : vector<1x256xf32> to vector<8x256xf32>
    %5 = arith.addf %2, %4 : vector<8x256xf32>
    %cst_5 = arith.constant 0.000000e+00 : f32
    %6 = vector.broadcast %cst_5 : f32 to vector<8x256xf32>
    %7 = arith.maximumf %5, %6 : vector<8x256xf32>
    %c0_6 = arith.constant 0 : index
    %c0_7 = arith.constant 0 : index
    %8 = vector.load %arg6[%c0_6, %c0_7] : memref<256x8xf32, #tpu.memory_space<vmem>>, vector<256x8xf32>
    %cst_8 = arith.constant dense<0.000000e+00> : vector<8x8xf32>
    %9 = tpu.matmul %7, %8, %cst_8 {dimension_numbers = #tpu.dot_dimension_numbers<[1], [0], [0], [1], [0, 0, 1, 1], [], []>} : vector<8x256xf32>, vector<256x8xf32>, vector<8x8xf32> -> vector<8x8xf32>
    %c0_9 = arith.constant 0 : index
    %c0_10 = arith.constant 0 : index
    %10 = vector.load %arg2[%c0_9, %c0_10] : memref<8x8xf32, #tpu.memory_space<vmem>>, vector<8x8xf32>
    %c0_11 = arith.constant 0 : index
    %11 = memref.load %arg1[%c0_11] : memref<3xf32, #tpu.memory_space<smem>>
    %c1 = arith.constant 1 : index
    %12 = memref.load %arg1[%c1] : memref<3xf32, #tpu.memory_space<smem>>
    %c2 = arith.constant 2 : index
    %13 = memref.load %arg1[%c2] : memref<3xf32, #tpu.memory_space<smem>>
    %14 = vector.broadcast %11 : f32 to vector<8x8xf32>
    %15 = arith.mulf %14, %10 : vector<8x8xf32>
    %16 = arith.mulf %15, %10 : vector<8x8xf32>
    %17 = vector.broadcast %12 : f32 to vector<8x8xf32>
    %18 = arith.mulf %17, %10 : vector<8x8xf32>
    %19 = arith.addf %16, %18 : vector<8x8xf32>
    %20 = vector.broadcast %13 : f32 to vector<8x8xf32>
    %21 = arith.addf %19, %20 : vector<8x8xf32>
    %22 = arith.addf %21, %9 : vector<8x8xf32>
    %c0_12 = arith.constant 0 : index
    %c0_13 = arith.constant 0 : index
    %23 = vector.load %arg7[%c0_12, %c0_13] : memref<8x8xf32, #tpu.memory_space<vmem>>, vector<8x8xf32>
    tpu.vector_store %arg7[%c0_12, %c0_13], %22 {strides = array<i32>} : memref<8x8xf32, #tpu.memory_space<vmem>>, vector<8x8xf32>,
    return
  }
  func.func @transform_0(%arg0: i32) -> i32 {
    %c0_i32 = arith.constant 0 : i32
    %c0_i32_0 = arith.constant 0 : i32
    return %c0_i32 : i32
  }
  func.func @transform_1(%arg0: i32) -> (i32, i32) {
    %c0_i32 = arith.constant 0 : i32
    %c0_i32_0 = arith.constant 0 : i32
    return %arg0, %c0_i32 : i32, i32
  }
  func.func @transform_2(%arg0: i32) -> (i32, i32) {
    %c0_i32 = arith.constant 0 : i32
    %c0_i32_0 = arith.constant 0 : i32
    return %arg0, %c0_i32 : i32, i32
  }
  func.func @transform_3(%arg0: i32) -> (i32, i32) {
    %c0_i32 = arith.constant 0 : i32
    %c0_i32_0 = arith.constant 0 : i32
    %c0_i32_1 = arith.constant 0 : i32
    return %c0_i32, %c0_i32_0 : i32, i32
  }
  func.func @transform_4(%arg0: i32) -> (i32, i32) {
    %c0_i32 = arith.constant 0 : i32
    %c0_i32_0 = arith.constant 0 : i32
    %c0_i32_1 = arith.constant 0 : i32
    return %c0_i32, %c0_i32_0 : i32, i32
  }
  func.func @transform_5(%arg0: i32) -> (i32, i32) {
    %c0_i32 = arith.constant 0 : i32
    %c0_i32_0 = arith.constant 0 : i32
    %c0_i32_1 = arith.constant 0 : i32
    return %c0_i32, %c0_i32_0 : i32, i32
  }
  func.func @transform_6(%arg0: i32) -> (i32, i32) {
    %c0_i32 = arith.constant 0 : i32
    %c0_i32_0 = arith.constant 0 : i32
    return %arg0, %c0_i32 : i32, i32
  }
}

</mosaic_0001>

<bundles_post_ra>
// kernel: tpu_custom_call.1
= control target key start
LH: loop header
LB: loop body
LE: loop exit
PB: predicated region body
PF: predicated region fallthrough
CT: control target
= control target key end

     0   :  { %11 = vsyncpa [#allocation4], 0  ;;  %s510_s0 = inlined_call_operand.hbm [shape: f32[3], index: 0, kind: input, shape index: {}]   ;;  %s511_s1 = inlined_call_operand.vmem [shape: f32[8,8], index: 1, kind: input, shape index: {}]   ;;  %s512_s2 = inlined_call_operand.vmem [shape: f32[8,128], index: 2, kind: input, shape index: {}]   ;;  %s513_s3 = inlined_call_operand.vmem [shape: f32[128,256], index: 3, kind: input, shape index: {}]   ;;  %s514_s4 = inlined_call_operand.vmem [shape: f32[1,256], index: 4, kind: input, shape index: {}]   ;;  %s515_s5 = inlined_call_operand.vmem [shape: f32[256,8], index: 5, kind: input, shape index: {}]   ;;  %s516_s6 = inlined_call_operand.hbm [shape: f32[8,8], index: 6, kind: output, shape index: {}]  }
   0x1   :  { %12 = vsyncpa [#allocation3], 0  ;;  %s18_s23 = sshll.u32 %s510_s0, 4  ;;  %s266_s24 = smov [#allocation2]   ;;  %s19_s23 = int_to_ptr.hbm [resolvable:$true] %s18_s23 }
   0x2   :  { %21 = dma.hbm_to_smem %s19_s23, 16, %s266_s24, [#allocation4]  }
   0x3   :  { %262 = dma.done.wait [#allocation4], 16  }
   0x4   :  { %263 = vsyncadd [#allocation4], 4294967280 }
   0x5   :  { %36 = sfence }
   0x6   :  { %v68_v0 = vld [vmem:[%s513_s3 + $0xf0] sm:$0xff]  ;;  %v69_v1 = vld [vmem:[%s513_s3 + $0xf8] sm:$0xff]  ;;  %v66_v2 = vld [vmem:[%s513_s3 + $0xe0] sm:$0xff]  ;;  %s191_s30 = sld [smem:[#allocation2]]  ;;  %s212_s11 = sshll.u32 %s516_s6, 4  ;;  %vm203_vm0 = vcmask 64512   ;;  %s213_s11 = int_to_ptr.hbm [resolvable:$true] %s212_s11 }
   0x7   :  { %76 = vmatpush.msra.mxu0 %v68_v0  ;;  %96 = vmatpush.msra.mxu1 %v69_v1  ;;  %v67_v3 = vld [vmem:[%s513_s3 + $0xe8] sm:$0xff]  ;;  %v64_v4 = vld [vmem:[%s513_s3 + $0xd0] sm:$0xff]  ;;  %v65_v5 = vld [vmem:[%s513_s3 + $0xd8] sm:$0xff]  ;;  %s222_s0 = sld [smem:[#allocation2 + $0x1]] }
   0x8   :  { %v62_v6 = vld [vmem:[%s513_s3 + $0xc0] sm:$0xff]  ;;  %v63_v7 = vld [vmem:[%s513_s3 + $0xc8] sm:$0xff]  ;;  %v60_v8 = vld [vmem:[%s513_s3 + $0xb0] sm:$0xff]  ;;  %s223_s8 = sld [smem:[#allocation2 + $0x2]] }
   0x9   :  { %77 = vmatpush.msra.mxu0 %v66_v2  ;;  %97 = vmatpush.msra.mxu1 %v67_v3  ;;  %v61_v9 = vld [vmem:[%s513_s3 + $0xb8] sm:$0xff]  ;;  %v58_v10 = vld [vmem:[%s513_s3 + $0xa0] sm:$0xff]  ;;  %v59_v11 = vld [vmem:[%s513_s3 + $0xa8] sm:$0xff] }
   0xa   :  { %v56_v12 = vld [vmem:[%s513_s3 + $0x90] sm:$0xff]  ;;  %v57_v13 = vld [vmem:[%s513_s3 + $0x98] sm:$0xff]  ;;  %v54_v17 = vld [vmem:[%s513_s3 + $0x80] sm:$0xff] }
   0xb   :  { %78 = vmatpush.msra.mxu0 %v64_v4  ;;  %98 = vmatpush.msra.mxu1 %v65_v5  ;;  %v133_v14 = vld [vmem:[%s515_s5 + $0x78] sm:$0xff]  ;;  %v132_v16 = vld [vmem:[%s515_s5 + $0x70] sm:$0xff]  ;;  %v55_v18 = vld [vmem:[%s513_s3 + $0x88] sm:$0xff] }
   0xc   :  { %v149_v15 = vld [vmem:[%s515_s5 + $0xf8] sm:$0xff]  ;;  %150 = vmatpush.msra.mxu2 %v133_v14  ;;  %v148_v19 = vld [vmem:[%s515_s5 + $0xf0] sm:$0xff]  ;;  %v131_v20 = vld [vmem:[%s515_s5 + $0x68] sm:$0xff] }
   0xd   :  { %79 = vmatpush.msra.mxu0 %v62_v6  ;;  %99 = vmatpush.msra.mxu1 %v63_v7  ;;  %v147_v21 = vld [vmem:[%s515_s5 + $0xe8] sm:$0xff]  ;;  %v52_v22 = vld [vmem:[%s513_s3 + $0x70] sm:$0xff]  ;;  %v53_v23 = vld [vmem:[%s513_s3 + $0x78] sm:$0xff] }
   0xe   :  { %170 = vmatpush.msra.mxu3 %v149_v15  ;;  %151 = vmatpush.msra.mxu2 %v132_v16  ;;  %v130_v24 = vld [vmem:[%s515_s5 + $0x60] sm:$0xff]  ;;  %v51_v27 = vld [vmem:[%s513_s3 + $0x68] sm:$0xff]  ;;  %v129_v28 = vld [vmem:[%s515_s5 + $0x58] sm:$0xff] }
   0xf   :  { %80 = vmatpush.msra.mxu0 %v60_v8  ;;  %100 = vmatpush.msra.mxu1 %v61_v9  ;;  %v146_v25 = vld [vmem:[%s515_s5 + $0xe0] sm:$0xff]  ;;  %v145_v29 = vld [vmem:[%s515_s5 + $0xd8] sm:$0xff]  ;;  %v48_v30 = vld [vmem:[%s513_s3 + $0x50] sm:$0xff] }
  0x10   :  { %171 = vmatpush.msra.mxu3 %v148_v19  ;;  %v50_v26 = vld [vmem:[%s513_s3 + $0x60] sm:$0xff]  ;;  %152 = vmatpush.msra.mxu2 %v131_v20  ;;  %v49_v31 = vld [vmem:[%s513_s3 + $0x58] sm:$0xff]  ;;  %v128_v32 = vld [vmem:[%s515_s5 + $0x50] sm:$0xff] }
  0x11   :  { %81 = vmatpush.msra.mxu0 %v58_v10  ;;  %101 = vmatpush.msra.mxu1 %v59_v11  ;;  %v144_v33 = vld [vmem:[%s515_s5 + $0xd0] sm:$0xff]  ;;  %v46_v34 = vld [vmem:[%s513_s3 + $0x40] sm:$0xff]  ;;  %v47_v35 = vld [vmem:[%s513_s3 + $0x48] sm:$0xff]  ;;  %v194_v11 = vstv %s191_s30 }
  0x12   :  { %172 = vmatpush.msra.mxu3 %v147_v21  ;;  %153 = vmatpush.msra.mxu2 %v130_v24  ;;  %v127_v36 = vld [vmem:[%s515_s5 + $0x48] sm:$0xff]  ;;  %v44_v38 = vld [vmem:[%s513_s3 + $0x30] sm:$0xff]  ;;  %v45_v39 = vld [vmem:[%s513_s3 + $0x38] sm:$0xff] }
  0x13   :  { %82 = vmatpush.msra.mxu0 %v56_v12  ;;  %102 = vmatpush.msra.mxu1 %v57_v13  ;;  %v143_v37 = vld [vmem:[%s515_s5 + $0xc8] sm:$0xff]  ;;  %v126_v40 = vld [vmem:[%s515_s5 + $0x40] sm:$0xff]  ;;  %v125_v44 = vld [vmem:[%s515_s5 + $0x38] sm:$0xff]  ;;  %v197_v13 = vstv %s222_s0 }
  0x14   :  { %173 = vmatpush.msra.mxu3 %v146_v25  ;;  %154 = vmatpush.msra.mxu2 %v129_v28  ;;  %v142_v41 = vld [vmem:[%s515_s5 + $0xc0] sm:$0xff]  ;;  %v43_v43 = vld [vmem:[%s513_s3 + $0x28] sm:$0xff]  ;;  %v141_v45 = vld [vmem:[%s515_s5 + $0xb8] sm:$0xff] }
  0x15   :  { %83 = vmatpush.msra.mxu0 %v54_v17  ;;  %103 = vmatpush.msra.mxu1 %v55_v18  ;;  %v42_v42 = vld [vmem:[%s513_s3 + $0x20] sm:$0xff]  ;;  %v40_v46 = vld [vmem:[%s513_s3 + $0x10] sm:$0xff]  ;;  %v41_v47 = vld [vmem:[%s513_s3 + $0x18] sm:$0xff]  ;;  %v200_v17 = vstv %s223_s8 }
  0x16   :  { %174 = vmatpush.msra.mxu3 %v145_v29  ;;  %155 = vmatpush.msra.mxu2 %v128_v32  ;;  %v124_v48 = vld [vmem:[%s515_s5 + $0x30] sm:$0xff]  ;;  %v38_v50 = vld [vmem:[%s513_s3] sm:$0xff]  ;;  %v39_v51 = vld [vmem:[%s513_s3 + $0x8] sm:$0xff] }
  0x17   :  { %84 = vmatpush.msra.mxu0 %v52_v22  ;;  %104 = vmatpush.msra.mxu1 %v53_v23  ;;  %v140_v49 = vld [vmem:[%s515_s5 + $0xb0] sm:$0xff]  ;;  %v37_v52 = vld [vmem:[%s512_s2] sm:$0xff]  ;;  %v123_v53 = vld [vmem:[%s515_s5 + $0x28] sm:$0xff] }
  0x18   :  { %175 = vmatpush.msra.mxu3 %v144_v33  ;;  %156 = vmatpush.msra.mxu2 %v127_v36  ;;  %v139_v54 = vld [vmem:[%s515_s5 + $0xa8] sm:$0xff]  ;;  %v122_v55 = vld [vmem:[%s515_s5 + $0x20] sm:$0xff]  ;;  %v121_v57 = vld [vmem:[%s515_s5 + $0x18] sm:$0xff] }
  0x19   :  { %85 = vmatpush.msra.mxu0 %v50_v26  ;;  %105 = vmatpush.msra.mxu1 %v51_v27  ;;  %v138_v56 = vld [vmem:[%s515_s5 + $0xa0] sm:$0xff]  ;;  %v137_v58 = vld [vmem:[%s515_s5 + $0x98] sm:$0xff]  ;;  %v120_v59 = vld [vmem:[%s515_s5 + $0x10] sm:$0xff] }
  0x1a   :  { %176 = vmatpush.msra.mxu3 %v143_v37  ;;  %157 = vmatpush.msra.mxu2 %v126_v40  ;;  %v136_v60 = vld [vmem:[%s515_s5 + $0x90] sm:$0xff]  ;;  %v119_v61 = vld [vmem:[%s515_s5 + $0x8] sm:$0xff]  ;;  %v118_v63 = vld [vmem:[%s515_s5] sm:$0xff] }
  0x1b   :  { %86 = vmatpush.msra.mxu0 %v48_v30  ;;  %106 = vmatpush.msra.mxu1 %v49_v31  ;;  %v135_v62 = vld [vmem:[%s515_s5 + $0x88] sm:$0xff]  ;;  %v134_v0 = vld [vmem:[%s515_s5 + $0x80] sm:$0xff] }
  0x1c   :  { %177 = vmatpush.msra.mxu3 %v142_v41  ;;  %158 = vmatpush.msra.mxu2 %v125_v44  ;;  %v70_v1 = vld [vmem:[%s514_s4] sm:$0x3]  ;;  %s267_s4 = smov [#allocation5]  }
  0x1d   :  { %87 = vmatpush.msra.mxu0 %v46_v34  ;;  %107 = vmatpush.msra.mxu1 %v47_v35  ;;  %v72_v2 = vperm.slane %v70_v1, 0  ;;  %v73_v3 = vperm.slane %v70_v1, 1  ;;  %v190_v10 = vld [vmem:[%s511_s1] sm:$0xff]  ;;  %s210_s9 = sshll.u32 %s267_s4, 4  ;;  %s211_s9 = int_to_ptr.vmem [resolvable:$true] %s210_s9 }
  0x1e   :  { %178 = vmatpush.msra.mxu3 %v141_v45  ;;  %159 = vmatpush.msra.mxu2 %v124_v48  ;;  %v195_v12 = vmul.f32 %v194_v11, %v190_v10  ;;  %v198_v15 = vmul.f32 %v197_v13, %v190_v10 }
  0x1f   :  { %88 = vmatpush.msra.mxu0 %v44_v38  ;;  %108 = vmatpush.msra.mxu1 %v45_v39 }
  0x20   :  { %179 = vmatpush.msra.mxu3 %v140_v49  ;;  %160 = vmatpush.msra.mxu2 %v123_v53  ;;  %v196_v14 = vmul.f32 %v195_v12, %v190_v10 }
  0x21   :  { %89 = vmatpush.msra.mxu0 %v42_v42  ;;  %109 = vmatpush.msra.mxu1 %v43_v43 }
  0x22   :  { %180 = vmatpush.msra.mxu3 %v139_v54  ;;  %161 = vmatpush.msra.mxu2 %v122_v55  ;;  %v199_v16 = vadd.f32 %v198_v15, %v196_v14 }
  0x23   :  { %90 = vmatpush.msra.mxu0 %v40_v46  ;;  %110 = vmatpush.msra.mxu1 %v41_v47 }
  0x24   :  { %181 = vmatpush.msra.mxu3 %v138_v56  ;;  %162 = vmatpush.msra.mxu2 %v121_v57  ;;  %v201_v18 = vadd.f32 %v200_v17, %v199_v16 }
  0x25   :  { %91 = vmatpush.msra.mxu0 %v38_v50  ;;  %111 = vmatpush.msra.mxu1 %v39_v51 }
  0x26   :  { %92 = vmatmul.f32.vlgmr.msra.gmra.mxu0 %v37_v52  ;;  %112 = vmatmul.f32.vlgmr.msra.gmra.mxu1 %v37_v52 }
  0x27   :  { %182 = vmatpush.msra.mxu3 %v137_v58  ;;  %163 = vmatpush.msra.mxu2 %v120_v59 }
  0x29   :  { %183 = vmatpush.msra.mxu3 %v136_v60  ;;  %164 = vmatpush.msra.mxu2 %v119_v61 }
  0x2b   :  { %184 = vmatpush.msra.mxu3 %v135_v62  ;;  %165 = vmatpush.msra.mxu2 %v118_v63 }
  0x2d   :  { %185 = vmatpush.msra.mxu3 %v134_v0 }
  0xa3   :  { %v93_v4 = vpop.f32.mrf.mxu0  ;;  %v113_v5 = vpop.f32.mrf.mxu1 }
  0xa4   :  { %v94_v6 = vadd.f32 %v93_v4, %v72_v2  ;;  %v114_v7 = vadd.f32 %v113_v5, %v73_v3 }
  0xa6   :  { %v116_v8 = vmax.f32 %v94_v6, 0.0  ;;  %v117_v9 = vmax.f32 %v114_v7, 0.0 }
  0xa8   :  { %166 = vmatmul.f32.vlgmr.msra.gmra.mxu2 %v116_v8  ;;  %186 = vmatmul.f32.vlgmr.msra.gmra.mxu3 %v117_v9 }
 0x12b   :  { %v167_v19 = vpop.f32.mrf.mxu2  ;;  %v187_v20 = vpop.f32.mrf.mxu3 }
 0x12c   :  { %v188_v21 = vadd.f32 %v187_v20, %v167_v19 }
 0x12e   :  { %v202_v22 = vadd.f32 %v201_v18, %v188_v21 }
 0x130   :  { %204 = vst.msk [vmem:[#allocation5] sm:$0xff] %vm203_vm0, %v202_v22 }
 0x131   :  { %215 = dma.vmem_to_hbm [thread:$0]  %s211_s9, 128, %s213_s11, [#allocation3]  }
 0x132   :  { %264 = dma.done.wait [#allocation3], 128  }
 0x133   :  { %265 = vsyncadd [#allocation3], 4294967168 }
 0x134   :  { %220 = vsyncpa [#allocation3], 1 }
 0x135   :  { %221 = vsyncpa [#allocation4], 1 }

</bundles_post_ra>
